<compile_context>
chip_gen: v7x
topology: tpu7x:2x2x1
jax: 0.10.0
libtpu: 0.0.40
codegen_flags: <defaults>
</compile_context>

<pallas_src>
import functools

import jax
import jax.numpy as jnp
from jax.experimental import pallas as pl
from jax.experimental.pallas import tpu as pltpu

MXU_DTYPE = jnp.bfloat16   # MXU operand dtype in the full model (f32 accumulation)
ACT_DTYPE = jnp.bfloat16   # activation storage dtype between kernels


# ----------------------------------------------------------------------------
# Elementwise helpers usable inside Pallas kernels (all math in f32).
# ----------------------------------------------------------------------------
def _erf(x):
    # Abramowitz & Stegun 7.1.26 (|err| < 1.5e-7); matches torch.nn.GELU (exact erf).
    p = 0.3275911
    a1, a2, a3, a4, a5 = 0.254829592, -0.284496736, 1.421413741, -1.453152027, 1.061405429
    ax = jnp.abs(x)
    t = 1.0 / (1.0 + p * ax)
    poly = t * (a1 + t * (a2 + t * (a3 + t * (a4 + t * a5))))
    y = 1.0 - poly * jnp.exp(-ax * ax)
    return jnp.where(x >= 0, y, -y)


def _gelu(x):
    return 0.5 * x * (1.0 + _erf(x * 0.7071067811865476))


# ----------------------------------------------------------------------------
# Pallas kernel 1: row-tiled matmul + bias (1x1 convs, Downsample im2col).
# ----------------------------------------------------------------------------
def _mm_bias_kernel(x_ref, w_ref, b_ref, o_ref, *, mxu_dtype):
    acc = jnp.dot(x_ref[...].astype(mxu_dtype), w_ref[...],
                  preferred_element_type=jnp.float32)
    o_ref[...] = (acc + b_ref[...]).astype(o_ref.dtype)


def matmul_bias(x, w, b, tm=512, mxu_dtype=MXU_DTYPE):
    """y = x @ w + b.  x: (M, K), w: (K, N), b: (N,)."""
    M, K = x.shape
    K2, N = w.shape
    assert K == K2
    tm = min(tm, M)
    grid = (pl.cdiv(M, tm),)
    out = pl.pallas_call(
        functools.partial(_mm_bias_kernel, mxu_dtype=mxu_dtype),
        out_shape=jax.ShapeDtypeStruct((M, N), x.dtype),
        grid_spec=pltpu.PrefetchScalarGridSpec(
            num_scalar_prefetch=0,
            grid=grid,
            in_specs=[
                pl.BlockSpec((tm, K), lambda i: (i, 0)),
                pl.BlockSpec((K, N), lambda i: (0, 0)),
                pl.BlockSpec((1, N), lambda i: (0, 0)),
            ],
            out_specs=pl.BlockSpec((tm, N), lambda i: (i, 0)),
        ),
        compiler_params=pltpu.CompilerParams(dimension_semantics=("parallel",)),
    )(x, w.astype(mxu_dtype), b.reshape(1, N).astype(jnp.float32))
    return out


def conv1x1(x, w, b, mxu_dtype=MXU_DTYPE):
    # x: (N, H, W, Cin); w: (Cout, Cin, 1, 1) (PyTorch layout); b: (Cout,)
    N, H, W, Cin = x.shape
    Cout = w.shape[0]
    wm = jnp.transpose(w.reshape(Cout, Cin))            # (Cin, Cout)
    y = matmul_bias(x.reshape(-1, Cin), wm, b, mxu_dtype=mxu_dtype)
    return y.reshape(N, H, W, Cout)


# ----------------------------------------------------------------------------
# Pallas kernel 2: fused GroupNorm(8) + GELU + 3x3 conv (+ residual), per frame.
# The padded image lives only in a VMEM scratch; the conv is 9 shifted MXU dots.
# ----------------------------------------------------------------------------
def _gn_gelu_conv3x3_kernel(*refs, H, W, Cin, Cout, groups, eps, has_res, mxu_dtype):
    if has_res:
        x_ref, g_ref, be_ref, w_ref, bias_ref, r_ref, o_ref, pad_ref = refs
    else:
        x_ref, g_ref, be_ref, w_ref, bias_ref, o_ref, pad_ref = refs
        r_ref = None

    x = x_ref[0].astype(jnp.float32)                     # (H, W, Cin)

    # --- single-pass GroupNorm statistics (per-channel sum / sumsq, folded to groups)
    s = jnp.sum(jnp.sum(x, axis=0), axis=0, keepdims=True)          # (1, Cin)
    ss = jnp.sum(jnp.sum(x * x, axis=0), axis=0, keepdims=True)     # (1, Cin)
    cg = Cin // groups
    onehot = (jax.lax.broadcasted_iota(jnp.int32, (Cin, groups), 0) // cg
              == jax.lax.broadcasted_iota(jnp.int32, (Cin, groups), 1)
              ).astype(jnp.float32)                                  # (Cin, G)
    onehot_t = (jax.lax.broadcasted_iota(jnp.int32, (groups, Cin), 0)
                == jax.lax.broadcasted_iota(jnp.int32, (groups, Cin), 1) // cg
                ).astype(jnp.float32)                                # (G, Cin)
    cnt = float(H * W * cg)
    mean_g = jnp.dot(s, onehot, preferred_element_type=jnp.float32) / cnt     # (1, G)
    ex2_g = jnp.dot(ss, onehot, preferred_element_type=jnp.float32) / cnt
    var_g = jnp.maximum(ex2_g - mean_g * mean_g, 0.0)
    inv_g = jax.lax.rsqrt(var_g + eps)
    mean_c = jnp.dot(mean_g, onehot_t, preferred_element_type=jnp.float32)    # (1, Cin)
    inv_c = jnp.dot(inv_g, onehot_t, preferred_element_type=jnp.float32)

    y = (x - mean_c) * inv_c * g_ref[...] + be_ref[...]
    y = _gelu(y)

    # --- zero-padded image in VMEM scratch, then 9-tap MXU accumulation
    pad_ref[...] = jnp.zeros((H + 2, W + 2, Cin), mxu_dtype)
    pad_ref[1:H + 1, 1:W + 1, :] = y.astype(mxu_dtype)

    acc = jnp.zeros((H * W, Cout), jnp.float32)
    for t in range(9):
        ky, kx = t // 3, t % 3
        patch = pad_ref[ky:ky + H, kx:kx + W, :].reshape(H * W, Cin)
        acc = acc + jnp.dot(patch, w_ref[t], preferred_element_type=jnp.float32)
    acc = acc + bias_ref[...]
    if has_res:
        acc = acc + r_ref[0].reshape(H * W, Cout).astype(jnp.float32)
    o_ref[0] = acc.reshape(H, W, Cout).astype(o_ref.dtype)


def gn_gelu_conv3x3(x, gamma, beta, w, b, res=None, groups=8, eps=1e-5,
                    mxu_dtype=MXU_DTYPE):
    """GroupNorm(groups) -> GELU -> Conv2d(3x3, pad=1) [+ res].  x: (N, H, W, Cin)."""
    N, H, W, Cin = x.shape
    Cout = w.shape[0]
    wt = jnp.transpose(w, (2, 3, 1, 0)).reshape(9, Cin, Cout).astype(mxu_dtype)
    g2 = gamma.reshape(1, Cin).astype(jnp.float32)
    be2 = beta.reshape(1, Cin).astype(jnp.float32)
    bias2 = b.reshape(1, Cout).astype(jnp.float32)

    in_specs = [
        pl.BlockSpec((1, H, W, Cin), lambda n: (n, 0, 0, 0)),
        pl.BlockSpec((1, Cin), lambda n: (0, 0)),
        pl.BlockSpec((1, Cin), lambda n: (0, 0)),
        pl.BlockSpec((9, Cin, Cout), lambda n: (0, 0, 0)),
        pl.BlockSpec((1, Cout), lambda n: (0, 0)),
    ]
    args = [x, g2, be2, wt, bias2]
    if res is not None:
        in_specs.append(pl.BlockSpec((1, H, W, Cout), lambda n: (n, 0, 0, 0)))
        args.append(res)

    kernel = functools.partial(
        _gn_gelu_conv3x3_kernel, H=H, W=W, Cin=Cin, Cout=Cout, groups=groups,
        eps=eps, has_res=res is not None, mxu_dtype=mxu_dtype)

    return pl.pallas_call(
        kernel,
        out_shape=jax.ShapeDtypeStruct((N, H, W, Cout), x.dtype),
        grid_spec=pltpu.PrefetchScalarGridSpec(
            num_scalar_prefetch=0,
            grid=(N,),
            in_specs=in_specs,
            out_specs=pl.BlockSpec((1, H, W, Cout), lambda n: (n, 0, 0, 0)),
            scratch_shapes=[pltpu.VMEM((H + 2, W + 2, Cin), mxu_dtype)],
        ),
        compiler_params=pltpu.CompilerParams(dimension_semantics=("parallel",)),
    )(*args)


# ----------------------------------------------------------------------------
# Pallas kernel 3: ConvTranspose2d(C, C, 4, stride=2, padding=1) via polyphase.
# Each of the 4 output phases is a 2x2 conv on the un-dilated input (no zero
# dilation, no 16x patches); phases are interleaved outside the kernel.
# ----------------------------------------------------------------------------
def _conv_t4x4_s2_kernel(x_ref, w_ref, b_ref, o_ref, pad_ref, *, H, W, Cin, Cout,
                         mxu_dtype):
    pad_ref[...] = jnp.zeros((H + 2, W + 2, Cin), mxu_dtype)
    pad_ref[1:H + 1, 1:W + 1, :] = x_ref[0].astype(mxu_dtype)
    for ey in range(2):
        for ex in range(2):
            acc = jnp.zeros((H * W, Cout), jnp.float32)
            for a in range(2):
                for b_ in range(2):
                    sy, sx = ey - a + 1, ex - b_ + 1          # slice starts in padded img
                    ky, kx = 2 * a + 1 - ey, 2 * b_ + 1 - ex  # weight tap
                    patch = pad_ref[sy:sy + H, sx:sx + W, :].reshape(H * W, Cin)
                    acc = acc + jnp.dot(patch, w_ref[ky * 4 + kx],
                                        preferred_element_type=jnp.float32)
            acc = acc + b_ref[...]
            o_ref[0, 2 * ey + ex] = acc.reshape(H, W, Cout).astype(o_ref.dtype)


def conv_transpose2d_4x4_s2(x, w, b, mxu_dtype=MXU_DTYPE):
    # x: (N, H, W, C); w: (Cin, Cout, 4, 4) (PyTorch ConvTranspose2d layout); b: (Cout,)
    N, H, W, Cin = x.shape
    Cout = w.shape[1]
    wt = jnp.transpose(w, (2, 3, 0, 1)).reshape(16, Cin, Cout).astype(mxu_dtype)
    y = pl.pallas_call(
        functools.partial(_conv_t4x4_s2_kernel, H=H, W=W, Cin=Cin, Cout=Cout,
                          mxu_dtype=mxu_dtype),
        out_shape=jax.ShapeDtypeStruct((N, 4, H, W, Cout), x.dtype),
        grid_spec=pltpu.PrefetchScalarGridSpec(
            num_scalar_prefetch=0,
            grid=(N,),
            in_specs=[
                pl.BlockSpec((1, H, W, Cin), lambda n: (n, 0, 0, 0)),
                pl.BlockSpec((16, Cin, Cout), lambda n: (0, 0, 0)),
                pl.BlockSpec((1, Cout), lambda n: (0, 0)),
            ],
            out_specs=pl.BlockSpec((1, 4, H, W, Cout), lambda n: (n, 0, 0, 0, 0)),
            scratch_shapes=[pltpu.VMEM((H + 2, W + 2, Cin), mxu_dtype)],
        ),
        compiler_params=pltpu.CompilerParams(dimension_semantics=("parallel",)),
    )(x, wt, b.reshape(1, Cout).astype(jnp.float32))
    # (N, phase, H, W, C) -> (N, 2H, 2W, C); phase = 2*ey + ex
    y = y.reshape(N, 2, 2, H, W, Cout).transpose(0, 3, 1, 4, 2, 5)
    return y.reshape(N, 2 * H, 2 * W, Cout)


# ----------------------------------------------------------------------------
# Downsample Conv2d(C, C, 3, stride=2, pad=1): plain-JAX im2col (2.25x) feeding
# the Pallas matmul kernel (only 3 instances in the network).
# ----------------------------------------------------------------------------
def conv2d_im2col(x, w, b, stride, padding, mxu_dtype=MXU_DTYPE):
    N, H, W, Cin = x.shape
    Cout, _, kh, kw = w.shape
    xpad = jnp.pad(x, ((0, 0), (padding, padding), (padding, padding), (0, 0)))
    Ho = (H + 2 * padding - kh) // stride + 1
    Wo = (W + 2 * padding - kw) // stride + 1
    cols = []
    for ky in range(kh):
        for kx in range(kw):
            cols.append(xpad[:, ky:ky + stride * (Ho - 1) + 1:stride,
                                kx:kx + stride * (Wo - 1) + 1:stride, :])
    patches = jnp.concatenate(cols, axis=-1).reshape(-1, kh * kw * Cin)
    wm = jnp.transpose(w, (2, 3, 1, 0)).reshape(kh * kw * Cin, Cout)
    y = matmul_bias(patches, wm, b, mxu_dtype=mxu_dtype)
    return y.reshape(N, Ho, Wo, Cout)


# ----------------------------------------------------------------------------
# Parameter init (deterministic, synthetic) and module application
# ----------------------------------------------------------------------------
def init_conv(key, cout, cin, kh, kw):
    k1, k2 = jax.random.split(key)
    return {"w": jax.random.normal(k1, (cout, cin, kh, kw), jnp.float32) * 0.05,
            "b": jax.random.normal(k2, (cout,), jnp.float32) * 0.05}


def init_gn(key, c):
    k1, k2 = jax.random.split(key)
    return {"gamma": 1.0 + 0.05 * jax.random.normal(k1, (c,), jnp.float32),
            "beta": 0.05 * jax.random.normal(k2, (c,), jnp.float32)}


def init_resblock(key, cin, cout):
    keys = jax.random.split(key, 5)
    p = {"norm1": init_gn(keys[0], cin),
         "conv1": init_conv(keys[1], cout, cin, 3, 3),
         "norm2": init_gn(keys[2], cout),
         "conv2": init_conv(keys[3], cout, cout, 3, 3)}
    if cin != cout:
        p["shortcut"] = init_conv(keys[4], cout, cin, 1, 1)
    return p


def apply_resblock(p, x, mxu_dtype=MXU_DTYPE):
    # h = conv1(gelu(norm1(x))); h = conv2(gelu(norm2(h))) + shortcut(x)
    if "shortcut" in p:
        sc = conv1x1(x, p["shortcut"]["w"], p["shortcut"]["b"], mxu_dtype=mxu_dtype)
    else:
        sc = x
    h = gn_gelu_conv3x3(x, p["norm1"]["gamma"], p["norm1"]["beta"],
                        p["conv1"]["w"], p["conv1"]["b"], mxu_dtype=mxu_dtype)
    return gn_gelu_conv3x3(h, p["norm2"]["gamma"], p["norm2"]["beta"],
                           p["conv2"]["w"], p["conv2"]["b"], res=sc,
                           mxu_dtype=mxu_dtype)


def init_model(key, variables, out_channels=3, hidden_channels=16,
               ch_mults=(1, 2, 2, 4), n_blocks=2):
    ch_mults = list(ch_mults)
    for i in range(1, len(ch_mults)):          # same in-place normalization as torch code
        ch_mults[i] = int(ch_mults[i] / ch_mults[i - 1])

    keys = iter(jax.random.split(key, 128))
    params = {"ch_mults": ch_mults}

    # image_proj: UniversalProjector with n_hidden_layers=0 -> single 1x1 conv
    params["image_proj"] = init_conv(next(keys), hidden_channels, len(variables), 1, 1)
    params["channel_map"] = {v: i for i, v in enumerate(variables)}

    down = []
    out_ch = in_ch = hidden_channels
    n_res = len(ch_mults)
    for i in range(n_res):
        out_ch = in_ch * ch_mults[i]
        for _ in range(n_blocks):
            down.append(("down", init_resblock(next(keys), in_ch, out_ch)))
            in_ch = out_ch
        if i < n_res - 1:
            down.append(("downsample", init_conv(next(keys), in_ch, in_ch, 3, 3)))
    params["down"] = down

    params["middle"] = {"res1": init_resblock(next(keys), out_ch, out_ch),
                        "res2": init_resblock(next(keys), out_ch, out_ch)}

    up = []
    in_ch = out_ch
    for i in reversed(range(n_res)):
        out_ch = in_ch
        for _ in range(n_blocks):
            up.append(("up", init_resblock(next(keys), in_ch + out_ch, out_ch)))
        out_ch = in_ch // ch_mults[i]
        up.append(("up", init_resblock(next(keys), in_ch + out_ch, out_ch)))
        in_ch = out_ch
        if i > 0:
            k1, k2 = jax.random.split(next(keys))
            up.append(("upsample",
                       {"w": jax.random.normal(k1, (in_ch, in_ch, 4, 4), jnp.float32) * 0.05,
                        "b": jax.random.normal(k2, (in_ch,), jnp.float32) * 0.05}))
    params["up"] = up

    params["norm"] = init_gn(next(keys), in_ch)
    params["final"] = init_conv(next(keys), out_channels, in_ch, 3, 3)
    return params


def apply_model(params, x, variables, mxu_dtype=MXU_DTYPE, act_dtype=ACT_DTYPE):
    """x: (B, C, T, H, W) float32.  Returns ((B, 3, T, H, W) float32, var_ids)."""
    b, c, t, h, w = x.shape
    var_ids = jnp.asarray([params["channel_map"][v] for v in variables], jnp.int32)

    # image_proj: permute/flatten to per-frame NHWC, gather weight input channels
    xb = jnp.transpose(x, (0, 2, 3, 4, 1)).reshape(b * t, h, w, c).astype(act_dtype)
    w_proj = params["image_proj"]["w"][:, var_ids, :, :]
    cur = conv1x1(xb, w_proj, params["image_proj"]["b"], mxu_dtype=mxu_dtype)

    hs = [cur]
    for kind, p in params["down"]:
        if kind == "down":
            cur = apply_resblock(p, cur, mxu_dtype)
        else:  # Downsample: Conv2d(C, C, 3, stride=2, padding=1)
            cur = conv2d_im2col(cur, p["w"], p["b"], stride=2, padding=1,
                                mxu_dtype=mxu_dtype)
        hs.append(cur)

    cur = apply_resblock(params["middle"]["res1"], cur, mxu_dtype)
    cur = apply_resblock(params["middle"]["res2"], cur, mxu_dtype)

    for kind, p in params["up"]:
        if kind == "upsample":
            cur = conv_transpose2d_4x4_s2(cur, p["w"], p["b"], mxu_dtype=mxu_dtype)
        else:
            s = hs.pop()
            cur = jnp.concatenate([cur, s], axis=-1)      # torch.cat((x, s), dim=1)
            cur = apply_resblock(p, cur, mxu_dtype)

    # final: GroupNorm + GELU + 3x3 conv, fused
    out = gn_gelu_conv3x3(cur, params["norm"]["gamma"], params["norm"]["beta"],
                          params["final"]["w"], params["final"]["b"],
                          mxu_dtype=mxu_dtype)

    out = out.astype(jnp.float32).reshape(b, t, h, w, -1)
    out = jnp.transpose(out, (0, 4, 1, 2, 3))             # (B, out_c, T, H, W)
    return out, var_ids


# ----------------------------------------------------------------------------
# Plain-JAX references for the in-script self-checks
# ----------------------------------------------------------------------------
def _ref_groupnorm_gelu(x, gamma, beta, groups=8, eps=1e-5):
    N, H, W, C = x.shape
    xg = x.reshape(N, H * W, groups, C // groups)
    mu = xg.mean(axis=(1, 3), keepdims=True)
    var = ((xg - mu) ** 2).mean(axis=(1, 3), keepdims=True)
    xn = ((xg - mu) / jnp.sqrt(var + eps)).reshape(N, H, W, C)
    return jax.nn.gelu(xn * gamma + beta, approximate=False)


def _ref_conv3x3(x, w, b):
    rhs = jnp.transpose(w, (2, 3, 1, 0))                  # HWIO
    y = jax.lax.conv_general_dilated(
        x, rhs, (1, 1), ((1, 1), (1, 1)),
        dimension_numbers=("NHWC", "HWIO", "NHWC"),
        precision=jax.lax.Precision.HIGHEST)
    return y + b


def _ref_conv_transpose_4x4_s2(x, w, b):
    rhs = jnp.transpose(jnp.flip(w, (2, 3)), (2, 3, 0, 1))  # (kh, kw, Cin, Cout)
    y = jax.lax.conv_general_dilated(
        x, rhs, (1, 1), ((2, 2), (2, 2)), lhs_dilation=(2, 2),
        dimension_numbers=("NHWC", "HWIO", "NHWC"),
        precision=jax.lax.Precision.HIGHEST)
    return y + b


# ----------------------------------------------------------------------------
if __name__ == "__main__":
    key = jax.random.PRNGKey(0)
    k_param, k_x, k1, k2, k3, k4, k5 = jax.random.split(key, 7)

    # --- self-check: row-tiled matmul+bias kernel (exercises a partial edge block)
    xa = jax.random.normal(k1, (1000, 48), jnp.float32)
    wa = jax.random.normal(k2, (48, 32), jnp.float32) * 0.1
    ba = jax.random.normal(k3, (32,), jnp.float32) * 0.1
    y_ref = jnp.dot(xa, wa, precision=jax.lax.Precision.HIGHEST) + ba
    y_f32 = matmul_bias(xa, wa, ba, mxu_dtype=jnp.float32)
    assert jnp.allclose(y_f32, y_ref, atol=1e-2, rtol=1e-2)
    y_bf = matmul_bias(xa, wa, ba, mxu_dtype=jnp.bfloat16)
    assert jnp.allclose(y_bf, y_ref, atol=1e-1, rtol=1e-1)

    # --- self-check: fused GroupNorm+GELU+conv3x3 (+residual) kernel
    xg = jax.random.normal(k1, (2, 16, 16, 32), jnp.float32)
    gg = 1.0 + 0.1 * jax.random.normal(k2, (32,), jnp.float32)
    bg = 0.1 * jax.random.normal(k3, (32,), jnp.float32)
    wc = jax.random.normal(k4, (24, 32, 3, 3), jnp.float32) * 0.1
    bc = jax.random.normal(k5, (24,), jnp.float32) * 0.1
    rr = jax.random.normal(k2, (2, 16, 16, 24), jnp.float32)
    y_k = gn_gelu_conv3x3(xg, gg, bg, wc, bc, res=rr, mxu_dtype=jnp.float32)
    y_r = _ref_conv3x3(_ref_groupnorm_gelu(xg, gg, bg), wc, bc) + rr
    assert jnp.allclose(y_k, y_r, atol=2e-2, rtol=2e-2)

    # --- self-check: polyphase ConvTranspose2d(4,4,stride=2,pad=1) kernel
    xu = jax.random.normal(k3, (2, 8, 8, 16), jnp.float32)
    wu = jax.random.normal(k4, (16, 16, 4, 4), jnp.float32) * 0.1
    bu = jax.random.normal(k5, (16,), jnp.float32) * 0.1
    y_k = conv_transpose2d_4x4_s2(xu, wu, bu, mxu_dtype=jnp.float32)
    y_r = _ref_conv_transpose_4x4_s2(xu, wu, bu)
    assert y_k.shape == y_r.shape
    assert jnp.allclose(y_k, y_r, atol=2e-2, rtol=2e-2)

    # --- full model forward (bf16 MXU operands / bf16 activations)
    variables = ["u10", "v10", "t2m", "msl"]
    B, T, H, W = 2, 2, 64, 64
    params = init_model(k_param, variables, out_channels=3, hidden_channels=16,
                        ch_mults=[1, 2, 2, 4], n_blocks=2)
    x = jax.random.normal(k_x, (B, len(variables), T, H, W), jnp.float32)

    out, var_ids = apply_model(params, x, variables,
                               mxu_dtype=jnp.bfloat16, act_dtype=jnp.bfloat16)
    out = jax.block_until_ready(out)

    assert out.shape == (B, 3, T, H, W), out.shape
    assert bool(jnp.all(jnp.isfinite(out)))
    assert var_ids.shape == (len(variables),)
    print("KERNEL_OK")
</pallas_src>

<mosaic_0001>
module attributes {stable_mosaic.version = 11 : i64} {
  func.func @_mm_bias_kernel(%arg0: i32, %arg1: memref<512x48xf32, #tpu.memory_space<vmem>>, %arg2: memref<48x32xf32, #tpu.memory_space<vmem>>, %arg3: memref<1x32xf32, #tpu.memory_space<vmem>>, %arg4: memref<512x32xf32, #tpu.memory_space<vmem>>) attributes {dimension_semantics = [#tpu.dimension_semantics<parallel>], iteration_bounds = array<i64: 2>, scalar_prefetch = 0 : i64, scratch_operands = 0 : i64, tpu.core_type = #tpu.core_type<tc>, window_params = [{transform_indices = @transform_0, window_bounds = array<i64: 512, 48>}, {pipeline_mode = #tpu.pipeline_mode<synchronous>, transform_indices = @transform_1, window_bounds = array<i64: 48, 32>}, {pipeline_mode = #tpu.pipeline_mode<synchronous>, transform_indices = @transform_2, window_bounds = array<i64: 1, 32>}, {transform_indices = @transform_3, window_bounds = array<i64: 512, 32>}]} {
    %c0 = arith.constant 0 : index
    %c0_0 = arith.constant 0 : index
    %0 = vector.load %arg1[%c0, %c0_0] : memref<512x48xf32, #tpu.memory_space<vmem>>, vector<512x48xf32>
    %c0_1 = arith.constant 0 : index
    %c0_2 = arith.constant 0 : index
    %1 = vector.load %arg2[%c0_1, %c0_2] : memref<48x32xf32, #tpu.memory_space<vmem>>, vector<48x32xf32>
    %cst = arith.constant dense<0.000000e+00> : vector<512x32xf32>
    %2 = tpu.matmul %0, %1, %cst {dimension_numbers = #tpu.dot_dimension_numbers<[1], [0], [0], [1], [0, 0, 1, 1], [], []>} : vector<512x48xf32>, vector<48x32xf32>, vector<512x32xf32> -> vector<512x32xf32>
    %c0_3 = arith.constant 0 : index
    %c0_4 = arith.constant 0 : index
    %3 = vector.load %arg3[%c0_3, %c0_4] : memref<1x32xf32, #tpu.memory_space<vmem>>, vector<1x32xf32>
    %4 = vector.broadcast %3 : vector<1x32xf32> to vector<512x32xf32>
    %5 = arith.addf %2, %4 : vector<512x32xf32>
    %c0_5 = arith.constant 0 : index
    %c0_6 = arith.constant 0 : index
    %6 = vector.load %arg4[%c0_5, %c0_6] : memref<512x32xf32, #tpu.memory_space<vmem>>, vector<512x32xf32>
    tpu.vector_store %arg4[%c0_5, %c0_6], %5 {strides = array<i32>} : memref<512x32xf32, #tpu.memory_space<vmem>>, vector<512x32xf32>,
    return
  }
  func.func @transform_0(%arg0: i32) -> (i32, i32) {
    %c0_i32 = arith.constant 0 : i32
    %c0_i32_0 = arith.constant 0 : i32
    return %arg0, %c0_i32 : i32, i32
  }
  func.func @transform_1(%arg0: i32) -> (i32, i32) {
    %c0_i32 = arith.constant 0 : i32
    %c0_i32_0 = arith.constant 0 : i32
    %c0_i32_1 = arith.constant 0 : i32
    return %c0_i32, %c0_i32_0 : i32, i32
  }
  func.func @transform_2(%arg0: i32) -> (i32, i32) {
    %c0_i32 = arith.constant 0 : i32
    %c0_i32_0 = arith.constant 0 : i32
    %c0_i32_1 = arith.constant 0 : i32
    return %c0_i32, %c0_i32_0 : i32, i32
  }
  func.func @transform_3(%arg0: i32) -> (i32, i32) {
    %c0_i32 = arith.constant 0 : i32
    %c0_i32_0 = arith.constant 0 : i32
    return %arg0, %c0_i32 : i32, i32
  }
}

</mosaic_0001>

<bundles_post_ra>
// kernel: tpu_custom_call.1
= control target key start
LH: loop header
LB: loop body
LE: loop exit
PB: predicated region body
PF: predicated region fallthrough
CT: control target
= control target key end

     0   :  { %s1863_s12 = smov 0   ;;  %s1865_s13 = smov 0   ;;  %s2454_s0 = inlined_call_operand.vmem [shape: f32[1000,48], index: 0, kind: input, shape index: {}]   ;;  %s2455_s1 = inlined_call_operand.vmem [shape: f32[48,32], index: 1, kind: input, shape index: {}]   ;;  %s2456_s2 = inlined_call_operand.vmem [shape: f32[1,32], index: 2, kind: input, shape index: {}]   ;;  %s2457_s3 = inlined_call_operand.vmem [shape: f32[1000,32], index: 3, kind: output, shape index: {}]  }
   0x1   :  { %s1867_s14 = smov 0  }
   0x2 LB: > { %s1876_s15 = sadd.s32 4294967295, %s1809_s14   ;;  %s1878_s16 = sadd.s32 1, %s1809_s14   ;;  %s1809_s14 = sphi %s1867_s14, %s2466_s14   ;;  %s1805_s13 = sphi %s1865_s13, %s2465_s13   ;;  %s1801_s12 = sphi %s1863_s12, %s2464_s12  }
   0x3   : > { %s85_s17 = ssub.s32 %s1809_s14, %s1878_s16  ;;  %s88_s18 = sadd.s32 1, %s1805_s13 }
   0x4   : > { %p86_p0 = scmp.eq.s32.totalorder %s85_s17, 0  ;;  %p98_p1 = scmp.ne.s32.totalorder %s1805_s13, %s1801_s12 }
   0x5   : > { %p99_p2 = scmp.eq.s32.totalorder %s1876_s15, 1  ;;  %p1382_p3 = scmp.ge.s32.totalorder %s1809_s14, 1 }
   0x6   : > { %s1886_s19 = scalar_select %p86_p0, %s1805_s13, %s88_s18  }
   0x7   : > { %p1888_p4 = por %p99_p2, %p98_p1  ;;  %p146_p5 = scmp.lt.s32.totalorder %s1809_s14, 3 }
   0x9   : > { %p147_p6 = pnand %p1382_p3, %p146_p5 }
   0xa   : > { %v256_v0 = vld [vmem:[%s2455_s1] sm:$0xff] (!%p147_p6)  ;;  %v257_v1 = vld [vmem:[%s2455_s1 + $0x8] sm:$0xff] (!%p147_p6)  ;;  %v258_v2 = vld [vmem:[%s2455_s1 + $0x10] sm:$0xff] (!%p147_p6)  ;;  %s1902_s27 = sshll.u32 (!%p147_p6), %s1876_s15, 6  ;;  %vm269_vm0 = vcmask (!%p147_p6), 392192   ;;  %s170_s14 = sand.u32 (!%p147_p6), 1, %s1801_s12  }
   0xb   : > { %150 = sbr.rel (%p147_p6) target bundleno = 373 (0x175), region = 32  ;;  %v1649_v3 = vpack.c.bf16 (!%p147_p6), %v257_v1, %v256_v0  ;;  %v259_v4 = vld [vmem:[%s2455_s1 + $0x18] sm:$0xff] (!%p147_p6)  ;;  %p178_p7 = scmp.lt.s32.totalorder (!%p147_p6), %s1902_s27, 124  ;;  %v260_v6 = vld [vmem:[%s2455_s1 + $0x20] sm:$0xff] (!%p147_p6)  ;;  %v261_v7 = vld [vmem:[%s2455_s1 + $0x28] sm:$0xff] (!%p147_p6)  ;;  %vm847_vm1 = vcmask (!%p147_p6), 261120  }
   0xc   : > { %v1653_v5 = vpack.c.bf16 (!%p147_p6), %v259_v4, %v258_v2  ;;  %v1657_v8 = vpack.c.bf16 (!%p147_p6), %v261_v7, %v260_v6  ;;  %s1383_s17 = sshll.u32 (!%p147_p6), %s170_s14, 9 }
   0xd   : > { %1650 = vmatprep.subr.bf16.mxu0 (!%p147_p6), %v1649_v3  ;;  %1661 = vmatprep.subr.bf16.mxu1 (!%p147_p6), %v1649_v3  ;;  %s2058_s12 = scalar_lea.vmem (!%p147_p6), [#allocation2], %s1383_s17  }
   0xe   : > { %1652 = vmatpush3.bf16.msra.mxu0 (!%p147_p6), %v1649_v3  ;;  %1664 = vmatpush3.bf16.msra.mxu1 (!%p147_p6), %v1649_v3 }
   0xf   : > { %1654 = vmatprep.subr.bf16.mxu0 (!%p147_p6), %v1653_v5  ;;  %1662 = vmatprep.subr.bf16.mxu1 (!%p147_p6), %v1653_v5 }
  0x12   : > { %s179_s7 = scalar_select %p178_p7, %s1902_s27, 124  ;;  %1656 = vmatpush3.bf16.msra.mxu0 %v1653_v5  ;;  %1665 = vmatpush3.bf16.msra.mxu1 %v1653_v5 }
  0x13   : > { %1658 = vmatprep.subr.bf16.mxu0 %v1657_v8  ;;  %1663 = vmatprep.subr.bf16.mxu1 %v1657_v8  ;;  %s920_s22 = ssub.s32 (%p1888_p4), 125, %s1902_s27  ;;  %s1468_s23 = sshll.u32 (%p1888_p4), %s1876_s15, 9 }
  0x14   : > { %s1385_s8 = sshll.u32 %s179_s7, 3  ;;  %p921_p8 = scmp.lt.s32.totalorder (%p1888_p4), %s920_s22, 64 }
  0x15   : > { %s1918_s11 = scalar_lea.vmem %s2454_s0, %s1385_s8  ;;  %s2255_s26 = scalar_lea.vmem (%p1888_p4), %s2457_s3, %s1468_s23  }
  0x16   : > { %v192_v9 = vld [vmem:[%s1918_s11] sm:$0xff]  ;;  %1660 = vmatpush3.bf16.msra.mxu0 %v1657_v8  ;;  %1666 = vmatpush3.bf16.msra.mxu1 %v1657_v8  ;;  %v193_v11 = vld [vmem:[%s1918_s11 + $0x8] sm:$0xff]  ;;  %v194_v13 = vld [vmem:[%s1918_s11 + $0x10] sm:$0xff] }
  0x17   : > { %v224_v10 = vld [vmem:[%s1918_s11 + $0x100] sm:$0xff]  ;;  %1553 = vmatprep.mubr.msk.f32.mxu0 %vm269_vm0, %v192_v9  ;;  %v225_v12 = vld [vmem:[%s1918_s11 + $0x108] sm:$0xff]  ;;  %v226_v14 = vld [vmem:[%s1918_s11 + $0x110] sm:$0xff] }
  0x18   : > { %1601 = vmatprep.mubr.msk.f32.mxu1 %vm269_vm0, %v224_v10  ;;  %v195_v15 = vld [vmem:[%s1918_s11 + $0x18] sm:$0xff]  ;;  %v196_v17 = vld [vmem:[%s1918_s11 + $0x20] sm:$0xff]  ;;  %v197_v19 = vld [vmem:[%s1918_s11 + $0x28] sm:$0xff] }
  0x19   : > { %1554 = vmatmul.mubr.msk.f32.vlgmr.msra.gmra.mrb[0].mxu0 %vm269_vm0, %v193_v11  ;;  %1602 = vmatmul.mubr.msk.f32.vlgmr.msra.gmra.mrb[0].mxu1 %vm269_vm0, %v225_v12  ;;  %v227_v16 = vld [vmem:[%s1918_s11 + $0x118] sm:$0xff]  ;;  %v228_v18 = vld [vmem:[%s1918_s11 + $0x120] sm:$0xff]  ;;  %v229_v20 = vld [vmem:[%s1918_s11 + $0x128] sm:$0xff] }
  0x1a   : > { %1556 = vmatprep.mubr.msk.f32.mxu0 %vm269_vm0, %v194_v13  ;;  %1604 = vmatprep.mubr.msk.f32.mxu1 %vm269_vm0, %v226_v14  ;;  %v198_v21 = vld [vmem:[%s1918_s11 + $0x30] sm:$0xff]  ;;  %v199_v23 = vld [vmem:[%s1918_s11 + $0x38] sm:$0xff]  ;;  %v200_v25 = vld [vmem:[%s1918_s11 + $0x40] sm:$0xff] }
  0x1b   : > { %v230_v22 = vld [vmem:[%s1918_s11 + $0x130] sm:$0xff]  ;;  %v231_v24 = vld [vmem:[%s1918_s11 + $0x138] sm:$0xff]  ;;  %v232_v26 = vld [vmem:[%s1918_s11 + $0x140] sm:$0xff] }
  0x1c   : > { %v201_v27 = vld [vmem:[%s1918_s11 + $0x48] sm:$0xff]  ;;  %v202_v29 = vld [vmem:[%s1918_s11 + $0x50] sm:$0xff]  ;;  %v203_v31 = vld [vmem:[%s1918_s11 + $0x58] sm:$0xff] }
  0x1d   : > { %1557 = vmatmul.mubr.msk.f32.gmra.mrb[2].mxu0 %vm269_vm0, %v195_v15  ;;  %1605 = vmatmul.mubr.msk.f32.gmra.mrb[2].mxu1 %vm269_vm0, %v227_v16  ;;  %v233_v28 = vld [vmem:[%s1918_s11 + $0x148] sm:$0xff]  ;;  %v234_v30 = vld [vmem:[%s1918_s11 + $0x150] sm:$0xff]  ;;  %v235_v32 = vld [vmem:[%s1918_s11 + $0x158] sm:$0xff] }
  0x1e   : > { %1559 = vmatprep.mubr.msk.f32.mxu0 %vm269_vm0, %v196_v17  ;;  %1607 = vmatprep.mubr.msk.f32.mxu1 %vm269_vm0, %v228_v18  ;;  %v204_v33 = vld [vmem:[%s1918_s11 + $0x60] sm:$0xff]  ;;  %v205_v35 = vld [vmem:[%s1918_s11 + $0x68] sm:$0xff]  ;;  %v206_v37 = vld [vmem:[%s1918_s11 + $0x70] sm:$0xff] }
  0x1f   : > { %v236_v34 = vld [vmem:[%s1918_s11 + $0x160] sm:$0xff]  ;;  %v237_v36 = vld [vmem:[%s1918_s11 + $0x168] sm:$0xff]  ;;  %v238_v38 = vld [vmem:[%s1918_s11 + $0x170] sm:$0xff] }
  0x20   : > { %v207_v39 = vld [vmem:[%s1918_s11 + $0x78] sm:$0xff]  ;;  %v208_v41 = vld [vmem:[%s1918_s11 + $0x80] sm:$0xff]  ;;  %v209_v43 = vld [vmem:[%s1918_s11 + $0x88] sm:$0xff] }
  0x21   : > { %1560 = vmatmul.mubr.msk.f32.gmra.mrb[4].mxu0 %vm269_vm0, %v197_v19  ;;  %1608 = vmatmul.mubr.msk.f32.gmra.mrb[4].mxu1 %vm269_vm0, %v229_v20  ;;  %v239_v40 = vld [vmem:[%s1918_s11 + $0x178] sm:$0xff]  ;;  %v240_v42 = vld [vmem:[%s1918_s11 + $0x180] sm:$0xff]  ;;  %v241_v44 = vld [vmem:[%s1918_s11 + $0x188] sm:$0xff] }
  0x22   : > { %1562 = vmatprep.mubr.msk.f32.mxu0 %vm269_vm0, %v198_v21  ;;  %1610 = vmatprep.mubr.msk.f32.mxu1 %vm269_vm0, %v230_v22  ;;  %v210_v45 = vld [vmem:[%s1918_s11 + $0x90] sm:$0xff]  ;;  %v211_v47 = vld [vmem:[%s1918_s11 + $0x98] sm:$0xff]  ;;  %v212_v49 = vld [vmem:[%s1918_s11 + $0xa0] sm:$0xff] }
  0x23   : > { %v242_v46 = vld [vmem:[%s1918_s11 + $0x190] sm:$0xff]  ;;  %v243_v48 = vld [vmem:[%s1918_s11 + $0x198] sm:$0xff]  ;;  %v244_v50 = vld [vmem:[%s1918_s11 + $0x1a0] sm:$0xff] }
  0x24   : > { %v213_v51 = vld [vmem:[%s1918_s11 + $0xa8] sm:$0xff]  ;;  %v214_v53 = vld [vmem:[%s1918_s11 + $0xb0] sm:$0xff]  ;;  %v215_v55 = vld [vmem:[%s1918_s11 + $0xb8] sm:$0xff] }
  0x25   : > { %1563 = vmatmul.mubr.msk.f32.gmra.mrb[6].mxu0 %vm269_vm0, %v199_v23  ;;  %1611 = vmatmul.mubr.msk.f32.gmra.mrb[6].mxu1 %vm269_vm0, %v231_v24  ;;  %v245_v52 = vld [vmem:[%s1918_s11 + $0x1a8] sm:$0xff]  ;;  %v246_v54 = vld [vmem:[%s1918_s11 + $0x1b0] sm:$0xff]  ;;  %v247_v56 = vld [vmem:[%s1918_s11 + $0x1b8] sm:$0xff] }
  0x26   : > { %1565 = vmatprep.mubr.msk.f32.mxu0 %vm269_vm0, %v200_v25  ;;  %1613 = vmatprep.mubr.msk.f32.mxu1 %vm269_vm0, %v232_v26  ;;  %v216_v57 = vld [vmem:[%s1918_s11 + $0xc0] sm:$0xff]  ;;  %v217_v59 = vld [vmem:[%s1918_s11 + $0xc8] sm:$0xff]  ;;  %v218_v61 = vld [vmem:[%s1918_s11 + $0xd0] sm:$0xff] }
  0x27   : > { %v248_v58 = vld [vmem:[%s1918_s11 + $0x1c0] sm:$0xff]  ;;  %v249_v60 = vld [vmem:[%s1918_s11 + $0x1c8] sm:$0xff]  ;;  %v250_v62 = vld [vmem:[%s1918_s11 + $0x1d0] sm:$0xff] }
  0x28   : > { %v219_v63 = vld [vmem:[%s1918_s11 + $0xd8] sm:$0xff]  ;;  %v220_v1 = vld [vmem:[%s1918_s11 + $0xe0] sm:$0xff]  ;;  %v221_v3 = vld [vmem:[%s1918_s11 + $0xe8] sm:$0xff] }
  0x29   : > { %1566 = vmatmul.mubr.msk.f32.gmra.mrb[8].mxu0 %vm269_vm0, %v201_v27  ;;  %1614 = vmatmul.mubr.msk.f32.gmra.mrb[8].mxu1 %vm269_vm0, %v233_v28  ;;  %v251_v0 = vld [vmem:[%s1918_s11 + $0x1d8] sm:$0xff]  ;;  %v252_v2 = vld [vmem:[%s1918_s11 + $0x1e0] sm:$0xff]  ;;  %v253_v4 = vld [vmem:[%s1918_s11 + $0x1e8] sm:$0xff] }
  0x2a   : > { %1568 = vmatprep.mubr.msk.f32.mxu0 %vm269_vm0, %v202_v29  ;;  %1616 = vmatprep.mubr.msk.f32.mxu1 %vm269_vm0, %v234_v30  ;;  %v222_v5 = vld [vmem:[%s1918_s11 + $0xf0] sm:$0xff]  ;;  %v223_v7 = vld [vmem:[%s1918_s11 + $0xf8] sm:$0xff]  ;;  %v2052_v9 = vld [vmem:[%s2456_s2] ss:$0 sm:$0xff] }
  0x2b   : > { %v254_v6 = vld [vmem:[%s1918_s11 + $0x1f0] sm:$0xff]  ;;  %v255_v8 = vld [vmem:[%s1918_s11 + $0x1f8] sm:$0xff] }
  0x2d   : > { %1569 = vmatmul.mubr.msk.f32.gmra.mrb[10].mxu0 %vm269_vm0, %v203_v31  ;;  %1617 = vmatmul.mubr.msk.f32.gmra.mrb[10].mxu1 %vm269_vm0, %v235_v32 }
  0x2e   : > { %1571 = vmatprep.mubr.msk.f32.mxu0 %vm269_vm0, %v204_v33  ;;  %1619 = vmatprep.mubr.msk.f32.mxu1 %vm269_vm0, %v236_v34 }
  0x31   : > { %1572 = vmatmul.mubr.msk.f32.gmra.mrb[12].mxu0 %vm269_vm0, %v205_v35  ;;  %1620 = vmatmul.mubr.msk.f32.gmra.mrb[12].mxu1 %vm269_vm0, %v237_v36 }
  0x32   : > { %1574 = vmatprep.mubr.msk.f32.mxu0 %vm269_vm0, %v206_v37  ;;  %1622 = vmatprep.mubr.msk.f32.mxu1 %vm269_vm0, %v238_v38 }
  0x35   : > { %1575 = vmatmul.mubr.msk.f32.gmra.mrb[14].mxu0 %vm269_vm0, %v207_v39  ;;  %1623 = vmatmul.mubr.msk.f32.gmra.mrb[14].mxu1 %vm269_vm0, %v239_v40 }
  0x36   : > { %1577 = vmatprep.mubr.msk.f32.mxu0 %vm269_vm0, %v208_v41  ;;  %1625 = vmatprep.mubr.msk.f32.mxu1 %vm269_vm0, %v240_v42 }
  0x39   : > { %1578 = vmatmul.mubr.msk.f32.gmra.mrb[16].mxu0 %vm269_vm0, %v209_v43  ;;  %1626 = vmatmul.mubr.msk.f32.gmra.mrb[16].mxu1 %vm269_vm0, %v241_v44 }
  0x3a   : > { %1580 = vmatprep.mubr.msk.f32.mxu0 %vm269_vm0, %v210_v45  ;;  %1628 = vmatprep.mubr.msk.f32.mxu1 %vm269_vm0, %v242_v46 }
  0x3d   : > { %1581 = vmatmul.mubr.msk.f32.gmra.mrb[18].mxu0 %vm269_vm0, %v211_v47  ;;  %1629 = vmatmul.mubr.msk.f32.gmra.mrb[18].mxu1 %vm269_vm0, %v243_v48 }
  0x3e   : > { %1583 = vmatprep.mubr.msk.f32.mxu0 %vm269_vm0, %v212_v49  ;;  %1631 = vmatprep.mubr.msk.f32.mxu1 %vm269_vm0, %v244_v50 }
  0x41   : > { %1584 = vmatmul.mubr.msk.f32.gmra.mrb[20].mxu0 %vm269_vm0, %v213_v51  ;;  %1632 = vmatmul.mubr.msk.f32.gmra.mrb[20].mxu1 %vm269_vm0, %v245_v52 }
  0x42   : > { %1586 = vmatprep.mubr.msk.f32.mxu0 %vm269_vm0, %v214_v53  ;;  %1634 = vmatprep.mubr.msk.f32.mxu1 %vm269_vm0, %v246_v54 }
  0x45   : > { %1587 = vmatmul.mubr.msk.f32.gmra.mrb[22].mxu0 %vm269_vm0, %v215_v55  ;;  %1635 = vmatmul.mubr.msk.f32.gmra.mrb[22].mxu1 %vm269_vm0, %v247_v56 }
  0x46   : > { %1589 = vmatprep.mubr.msk.f32.mxu0 %vm269_vm0, %v216_v57  ;;  %1637 = vmatprep.mubr.msk.f32.mxu1 %vm269_vm0, %v248_v58 }
  0x49   : > { %1590 = vmatmul.mubr.msk.f32.gmra.mrb[24].mxu0 %vm269_vm0, %v217_v59  ;;  %1638 = vmatmul.mubr.msk.f32.gmra.mrb[24].mxu1 %vm269_vm0, %v249_v60 }
  0x4a   : > { %1592 = vmatprep.mubr.msk.f32.mxu0 %vm269_vm0, %v218_v61  ;;  %1640 = vmatprep.mubr.msk.f32.mxu1 %vm269_vm0, %v250_v62 }
  0x4d   : > { %1593 = vmatmul.mubr.msk.f32.gmra.mrb[26].mxu0 %vm269_vm0, %v219_v63  ;;  %1641 = vmatmul.mubr.msk.f32.gmra.mrb[26].mxu1 %vm269_vm0, %v251_v0 }
  0x4e   : > { %1595 = vmatprep.mubr.msk.f32.mxu0 %vm269_vm0, %v220_v1  ;;  %1643 = vmatprep.mubr.msk.f32.mxu1 %vm269_vm0, %v252_v2 }
  0x51   : > { %1596 = vmatmul.mubr.msk.f32.gmra.mrb[28].mxu0 %vm269_vm0, %v221_v3  ;;  %1644 = vmatmul.mubr.msk.f32.gmra.mrb[28].mxu1 %vm269_vm0, %v253_v4 }
  0x52   : > { %1598 = vmatprep.mubr.msk.f32.mxu0 %vm269_vm0, %v222_v5  ;;  %1646 = vmatprep.mubr.msk.f32.mxu1 %vm269_vm0, %v254_v6 }
  0x55   : > { %1599 = vmatmul.mubr.msk.f32.gmra.mrb[30].mxu0 %vm269_vm0, %v223_v7  ;;  %1647 = vmatmul.mubr.msk.f32.gmra.mrb[30].mxu1 %vm269_vm0, %v255_v8 }
  0xec   : > { %v1555_v10 = vpop.f32.mrb[0].mxu0  ;;  %v1603_v11 = vpop.f32.mrb[0].mxu1 }
  0xed   : > { %v534_v12 = vadd.f32 %v1555_v10, %v2052_v9  ;;  %v694_v13 = vadd.f32 %v1603_v11, %v2052_v9  ;;  %v528_v14 = vpop.f32.mrb[1].mxu0  ;;  %v688_v15 = vpop.f32.mrb[1].mxu1 }
  0xee   : > { %v529_v16 = vadd.f32 %v2052_v9, %v528_v14  ;;  %v689_v17 = vadd.f32 %v2052_v9, %v688_v15 }
  0xef   : > { %849 = vst.msk [vmem:[%s2058_s12 + $0x8] sm:$0xff] %vm847_vm1, %v534_v12  ;;  %881 = vst.msk [vmem:[%s2058_s12 + $0x108] sm:$0xff] %vm847_vm1, %v694_v13 }
  0xf0   : > { %848 = vst.msk [vmem:[%s2058_s12] sm:$0xff] %vm847_vm1, %v529_v16  ;;  %880 = vst.msk [vmem:[%s2058_s12 + $0x100] sm:$0xff] %vm847_vm1, %v689_v17  ;;  %v1558_v18 = vpop.f32.mrb[2].mxu0  ;;  %v1606_v19 = vpop.f32.mrb[2].mxu1 }
  0xf1   : > { %v544_v20 = vadd.f32 %v1558_v18, %v2052_v9  ;;  %v704_v21 = vadd.f32 %v1606_v19, %v2052_v9  ;;  %v538_v22 = vpop.f32.mrb[3].mxu0  ;;  %v698_v23 = vpop.f32.mrb[3].mxu1 }
  0xf2   : > { %v539_v24 = vadd.f32 %v2052_v9, %v538_v22  ;;  %v699_v25 = vadd.f32 %v2052_v9, %v698_v23 }
  0xf3   : > { %851 = vst.msk [vmem:[%s2058_s12 + $0x18] sm:$0xff] %vm847_vm1, %v544_v20  ;;  %883 = vst.msk [vmem:[%s2058_s12 + $0x118] sm:$0xff] %vm847_vm1, %v704_v21 }
  0xf4   : > { %850 = vst.msk [vmem:[%s2058_s12 + $0x10] sm:$0xff] %vm847_vm1, %v539_v24  ;;  %882 = vst.msk [vmem:[%s2058_s12 + $0x110] sm:$0xff] %vm847_vm1, %v699_v25  ;;  %v1561_v26 = vpop.f32.mrb[4].mxu0  ;;  %v1609_v27 = vpop.f32.mrb[4].mxu1 }
  0xf5   : > { %v554_v28 = vadd.f32 %v1561_v26, %v2052_v9  ;;  %v714_v29 = vadd.f32 %v1609_v27, %v2052_v9  ;;  %v548_v30 = vpop.f32.mrb[5].mxu0  ;;  %v708_v31 = vpop.f32.mrb[5].mxu1 }
  0xf6   : > { %v549_v32 = vadd.f32 %v2052_v9, %v548_v30  ;;  %v709_v33 = vadd.f32 %v2052_v9, %v708_v31 }
  0xf7   : > { %853 = vst.msk [vmem:[%s2058_s12 + $0x28] sm:$0xff] %vm847_vm1, %v554_v28  ;;  %885 = vst.msk [vmem:[%s2058_s12 + $0x128] sm:$0xff] %vm847_vm1, %v714_v29 }
  0xf8   : > { %852 = vst.msk [vmem:[%s2058_s12 + $0x20] sm:$0xff] %vm847_vm1, %v549_v32  ;;  %884 = vst.msk [vmem:[%s2058_s12 + $0x120] sm:$0xff] %vm847_vm1, %v709_v33  ;;  %v1564_v34 = vpop.f32.mrb[6].mxu0  ;;  %v1612_v35 = vpop.f32.mrb[6].mxu1 }
  0xf9   : > { %v564_v36 = vadd.f32 %v1564_v34, %v2052_v9  ;;  %v724_v37 = vadd.f32 %v1612_v35, %v2052_v9  ;;  %v558_v38 = vpop.f32.mrb[7].mxu0  ;;  %v718_v39 = vpop.f32.mrb[7].mxu1 }
  0xfa   : > { %v559_v40 = vadd.f32 %v2052_v9, %v558_v38  ;;  %v719_v41 = vadd.f32 %v2052_v9, %v718_v39 }
  0xfb   : > { %855 = vst.msk [vmem:[%s2058_s12 + $0x38] sm:$0xff] %vm847_vm1, %v564_v36  ;;  %887 = vst.msk [vmem:[%s2058_s12 + $0x138] sm:$0xff] %vm847_vm1, %v724_v37 }
  0xfc   : > { %854 = vst.msk [vmem:[%s2058_s12 + $0x30] sm:$0xff] %vm847_vm1, %v559_v40  ;;  %886 = vst.msk [vmem:[%s2058_s12 + $0x130] sm:$0xff] %vm847_vm1, %v719_v41  ;;  %v1567_v42 = vpop.f32.mrb[8].mxu0  ;;  %v1615_v43 = vpop.f32.mrb[8].mxu1 }
  0xfd   : > { %v574_v44 = vadd.f32 %v1567_v42, %v2052_v9  ;;  %v734_v45 = vadd.f32 %v1615_v43, %v2052_v9  ;;  %v568_v46 = vpop.f32.mrb[9].mxu0  ;;  %v728_v47 = vpop.f32.mrb[9].mxu1 }
  0xfe   : > { %v569_v48 = vadd.f32 %v2052_v9, %v568_v46  ;;  %v729_v49 = vadd.f32 %v2052_v9, %v728_v47 }
  0xff   : > { %857 = vst.msk [vmem:[%s2058_s12 + $0x48] sm:$0xff] %vm847_vm1, %v574_v44  ;;  %889 = vst.msk [vmem:[%s2058_s12 + $0x148] sm:$0xff] %vm847_vm1, %v734_v45 }
 0x100   : > { %856 = vst.msk [vmem:[%s2058_s12 + $0x40] sm:$0xff] %vm847_vm1, %v569_v48  ;;  %888 = vst.msk [vmem:[%s2058_s12 + $0x140] sm:$0xff] %vm847_vm1, %v729_v49  ;;  %v1570_v50 = vpop.f32.mrb[10].mxu0  ;;  %v1618_v51 = vpop.f32.mrb[10].mxu1 }
 0x101   : > { %v584_v52 = vadd.f32 %v1570_v50, %v2052_v9  ;;  %v744_v53 = vadd.f32 %v1618_v51, %v2052_v9  ;;  %v578_v54 = vpop.f32.mrb[11].mxu0  ;;  %v738_v55 = vpop.f32.mrb[11].mxu1 }
 0x102   : > { %v579_v56 = vadd.f32 %v2052_v9, %v578_v54  ;;  %v739_v57 = vadd.f32 %v2052_v9, %v738_v55 }
 0x103   : > { %859 = vst.msk [vmem:[%s2058_s12 + $0x58] sm:$0xff] %vm847_vm1, %v584_v52  ;;  %891 = vst.msk [vmem:[%s2058_s12 + $0x158] sm:$0xff] %vm847_vm1, %v744_v53 }
 0x104   : > { %858 = vst.msk [vmem:[%s2058_s12 + $0x50] sm:$0xff] %vm847_vm1, %v579_v56  ;;  %890 = vst.msk [vmem:[%s2058_s12 + $0x150] sm:$0xff] %vm847_vm1, %v739_v57  ;;  %v1573_v58 = vpop.f32.mrb[12].mxu0  ;;  %v1621_v59 = vpop.f32.mrb[12].mxu1 }
 0x105   : > { %v594_v60 = vadd.f32 %v1573_v58, %v2052_v9  ;;  %v754_v61 = vadd.f32 %v1621_v59, %v2052_v9  ;;  %v588_v62 = vpop.f32.mrb[13].mxu0  ;;  %v748_v63 = vpop.f32.mrb[13].mxu1 }
 0x106   : > { %v589_v0 = vadd.f32 %v2052_v9, %v588_v62  ;;  %v749_v1 = vadd.f32 %v2052_v9, %v748_v63 }
 0x107   : > { %861 = vst.msk [vmem:[%s2058_s12 + $0x68] sm:$0xff] %vm847_vm1, %v594_v60  ;;  %893 = vst.msk [vmem:[%s2058_s12 + $0x168] sm:$0xff] %vm847_vm1, %v754_v61 }
 0x108   : > { %860 = vst.msk [vmem:[%s2058_s12 + $0x60] sm:$0xff] %vm847_vm1, %v589_v0  ;;  %892 = vst.msk [vmem:[%s2058_s12 + $0x160] sm:$0xff] %vm847_vm1, %v749_v1  ;;  %v1576_v2 = vpop.f32.mrb[14].mxu0  ;;  %v1624_v3 = vpop.f32.mrb[14].mxu1 }
 0x109   : > { %v604_v4 = vadd.f32 %v1576_v2, %v2052_v9  ;;  %v764_v5 = vadd.f32 %v1624_v3, %v2052_v9  ;;  %v598_v6 = vpop.f32.mrb[15].mxu0  ;;  %v758_v7 = vpop.f32.mrb[15].mxu1 }
 0x10a   : > { %v599_v8 = vadd.f32 %v2052_v9, %v598_v6  ;;  %v759_v10 = vadd.f32 %v2052_v9, %v758_v7 }
 0x10b   : > { %863 = vst.msk [vmem:[%s2058_s12 + $0x78] sm:$0xff] %vm847_vm1, %v604_v4  ;;  %895 = vst.msk [vmem:[%s2058_s12 + $0x178] sm:$0xff] %vm847_vm1, %v764_v5 }
 0x10c   : > { %862 = vst.msk [vmem:[%s2058_s12 + $0x70] sm:$0xff] %vm847_vm1, %v599_v8  ;;  %894 = vst.msk [vmem:[%s2058_s12 + $0x170] sm:$0xff] %vm847_vm1, %v759_v10  ;;  %v1579_v11 = vpop.f32.mrb[16].mxu0  ;;  %v1627_v12 = vpop.f32.mrb[16].mxu1 }
 0x10d   : > { %v614_v13 = vadd.f32 %v1579_v11, %v2052_v9  ;;  %v774_v14 = vadd.f32 %v1627_v12, %v2052_v9  ;;  %v608_v15 = vpop.f32.mrb[17].mxu0  ;;  %v768_v16 = vpop.f32.mrb[17].mxu1 }
 0x10e   : > { %v609_v17 = vadd.f32 %v2052_v9, %v608_v15  ;;  %v769_v18 = vadd.f32 %v2052_v9, %v768_v16 }
 0x10f   : > { %865 = vst.msk [vmem:[%s2058_s12 + $0x88] sm:$0xff] %vm847_vm1, %v614_v13  ;;  %897 = vst.msk [vmem:[%s2058_s12 + $0x188] sm:$0xff] %vm847_vm1, %v774_v14 }
 0x110   : > { %864 = vst.msk [vmem:[%s2058_s12 + $0x80] sm:$0xff] %vm847_vm1, %v609_v17  ;;  %896 = vst.msk [vmem:[%s2058_s12 + $0x180] sm:$0xff] %vm847_vm1, %v769_v18  ;;  %v1582_v19 = vpop.f32.mrb[18].mxu0  ;;  %v1630_v20 = vpop.f32.mrb[18].mxu1 }
 0x111   : > { %v624_v21 = vadd.f32 %v1582_v19, %v2052_v9  ;;  %v784_v22 = vadd.f32 %v1630_v20, %v2052_v9  ;;  %v618_v23 = vpop.f32.mrb[19].mxu0  ;;  %v778_v24 = vpop.f32.mrb[19].mxu1 }
 0x112   : > { %v619_v25 = vadd.f32 %v2052_v9, %v618_v23  ;;  %v779_v26 = vadd.f32 %v2052_v9, %v778_v24 }
 0x113   : > { %867 = vst.msk [vmem:[%s2058_s12 + $0x98] sm:$0xff] %vm847_vm1, %v624_v21  ;;  %899 = vst.msk [vmem:[%s2058_s12 + $0x198] sm:$0xff] %vm847_vm1, %v784_v22 }
 0x114   : > { %866 = vst.msk [vmem:[%s2058_s12 + $0x90] sm:$0xff] %vm847_vm1, %v619_v25  ;;  %898 = vst.msk [vmem:[%s2058_s12 + $0x190] sm:$0xff] %vm847_vm1, %v779_v26  ;;  %v1585_v27 = vpop.f32.mrb[20].mxu0  ;;  %v1633_v28 = vpop.f32.mrb[20].mxu1 }
 0x115   : > { %v634_v29 = vadd.f32 %v1585_v27, %v2052_v9  ;;  %v794_v30 = vadd.f32 %v1633_v28, %v2052_v9  ;;  %v628_v31 = vpop.f32.mrb[21].mxu0  ;;  %v788_v32 = vpop.f32.mrb[21].mxu1 }
 0x116   : > { %v629_v33 = vadd.f32 %v2052_v9, %v628_v31  ;;  %v789_v34 = vadd.f32 %v2052_v9, %v788_v32 }
 0x117   : > { %869 = vst.msk [vmem:[%s2058_s12 + $0xa8] sm:$0xff] %vm847_vm1, %v634_v29  ;;  %901 = vst.msk [vmem:[%s2058_s12 + $0x1a8] sm:$0xff] %vm847_vm1, %v794_v30 }
 0x118   : > { %868 = vst.msk [vmem:[%s2058_s12 + $0xa0] sm:$0xff] %vm847_vm1, %v629_v33  ;;  %900 = vst.msk [vmem:[%s2058_s12 + $0x1a0] sm:$0xff] %vm847_vm1, %v789_v34  ;;  %v1588_v35 = vpop.f32.mrb[22].mxu0  ;;  %v1636_v36 = vpop.f32.mrb[22].mxu1 }
 0x119   : > { %v644_v37 = vadd.f32 %v1588_v35, %v2052_v9  ;;  %v804_v38 = vadd.f32 %v1636_v36, %v2052_v9  ;;  %v638_v39 = vpop.f32.mrb[23].mxu0  ;;  %v798_v40 = vpop.f32.mrb[23].mxu1 }
 0x11a   : > { %v639_v41 = vadd.f32 %v2052_v9, %v638_v39  ;;  %v799_v42 = vadd.f32 %v2052_v9, %v798_v40 }
 0x11b   : > { %871 = vst.msk [vmem:[%s2058_s12 + $0xb8] sm:$0xff] %vm847_vm1, %v644_v37  ;;  %903 = vst.msk [vmem:[%s2058_s12 + $0x1b8] sm:$0xff] %vm847_vm1, %v804_v38 }
 0x11c   : > { %870 = vst.msk [vmem:[%s2058_s12 + $0xb0] sm:$0xff] %vm847_vm1, %v639_v41  ;;  %902 = vst.msk [vmem:[%s2058_s12 + $0x1b0] sm:$0xff] %vm847_vm1, %v799_v42  ;;  %v1591_v43 = vpop.f32.mrb[24].mxu0  ;;  %v1639_v44 = vpop.f32.mrb[24].mxu1 }
 0x11d   : > { %v654_v45 = vadd.f32 %v1591_v43, %v2052_v9  ;;  %v814_v46 = vadd.f32 %v1639_v44, %v2052_v9  ;;  %v648_v47 = vpop.f32.mrb[25].mxu0  ;;  %v808_v48 = vpop.f32.mrb[25].mxu1 }
 0x11e   : > { %v649_v49 = vadd.f32 %v2052_v9, %v648_v47  ;;  %v809_v50 = vadd.f32 %v2052_v9, %v808_v48 }
 0x11f   : > { %873 = vst.msk [vmem:[%s2058_s12 + $0xc8] sm:$0xff] %vm847_vm1, %v654_v45  ;;  %905 = vst.msk [vmem:[%s2058_s12 + $0x1c8] sm:$0xff] %vm847_vm1, %v814_v46 }
 0x120   : > { %872 = vst.msk [vmem:[%s2058_s12 + $0xc0] sm:$0xff] %vm847_vm1, %v649_v49  ;;  %904 = vst.msk [vmem:[%s2058_s12 + $0x1c0] sm:$0xff] %vm847_vm1, %v809_v50  ;;  %v1594_v51 = vpop.f32.mrb[26].mxu0  ;;  %v1642_v52 = vpop.f32.mrb[26].mxu1 }
 0x121   : > { %v664_v53 = vadd.f32 %v1594_v51, %v2052_v9  ;;  %v824_v54 = vadd.f32 %v1642_v52, %v2052_v9  ;;  %v658_v55 = vpop.f32.mrb[27].mxu0  ;;  %v818_v56 = vpop.f32.mrb[27].mxu1 }
 0x122   : > { %v659_v57 = vadd.f32 %v2052_v9, %v658_v55  ;;  %v819_v58 = vadd.f32 %v2052_v9, %v818_v56 }
 0x123   : > { %875 = vst.msk [vmem:[%s2058_s12 + $0xd8] sm:$0xff] %vm847_vm1, %v664_v53  ;;  %907 = vst.msk [vmem:[%s2058_s12 + $0x1d8] sm:$0xff] %vm847_vm1, %v824_v54 }
 0x124   : > { %874 = vst.msk [vmem:[%s2058_s12 + $0xd0] sm:$0xff] %vm847_vm1, %v659_v57  ;;  %906 = vst.msk [vmem:[%s2058_s12 + $0x1d0] sm:$0xff] %vm847_vm1, %v819_v58  ;;  %v1597_v59 = vpop.f32.mrb[28].mxu0  ;;  %v1645_v60 = vpop.f32.mrb[28].mxu1 }
 0x125   : > { %v674_v61 = vadd.f32 %v1597_v59, %v2052_v9  ;;  %v834_v62 = vadd.f32 %v1645_v60, %v2052_v9  ;;  %v668_v63 = vpop.f32.mrb[29].mxu0  ;;  %v828_v0 = vpop.f32.mrb[29].mxu1 }
 0x126   : > { %v669_v1 = vadd.f32 %v2052_v9, %v668_v63  ;;  %v829_v2 = vadd.f32 %v2052_v9, %v828_v0  ;;  %918 = sbr.rel (!%p1888_p4) target bundleno = 373 (0x175), region = 36 }
 0x127   : > { %877 = vst.msk [vmem:[%s2058_s12 + $0xe8] sm:$0xff] %vm847_vm1, %v674_v61  ;;  %909 = vst.msk [vmem:[%s2058_s12 + $0x1e8] sm:$0xff] %vm847_vm1, %v834_v62 }
 0x128   : > { %876 = vst.msk [vmem:[%s2058_s12 + $0xe0] sm:$0xff] %vm847_vm1, %v669_v1  ;;  %908 = vst.msk [vmem:[%s2058_s12 + $0x1e0] sm:$0xff] %vm847_vm1, %v829_v2  ;;  %v1600_v3 = vpop.f32.mrb[30].mxu0  ;;  %v1648_v4 = vpop.f32.mrb[30].mxu1 }
 0x129   : > { %v684_v5 = vadd.f32 %v1600_v3, %v2052_v9  ;;  %v844_v6 = vadd.f32 %v1648_v4, %v2052_v9  ;;  %v678_v7 = vpop.f32.mrb[31].mxu0  ;;  %v838_v8 = vpop.f32.mrb[31].mxu1 }
 0x12a   : > { %v679_v10 = vadd.f32 %v2052_v9, %v678_v7  ;;  %v839_v11 = vadd.f32 %v2052_v9, %v838_v8 }
 0x12b   : > { %879 = vst.msk [vmem:[%s2058_s12 + $0xf8] sm:$0xff] %vm847_vm1, %v684_v5  ;;  %911 = vst.msk [vmem:[%s2058_s12 + $0x1f8] sm:$0xff] %vm847_vm1, %v844_v6 }
 0x12c   : > { %878 = vst.msk [vmem:[%s2058_s12 + $0xf0] sm:$0xff] %vm847_vm1, %v679_v10  ;;  %910 = vst.msk [vmem:[%s2058_s12 + $0x1f0] sm:$0xff] %vm847_vm1, %v839_v11 }
 0x12d   : > { %s2468_s22 = smov (!%p921_p8, %s920_s22), 64 }
 0x12e   : > { %s1453_s28 = sshll.u32 %s2468_s22, 7 }
 0x12f   : > { %p1456_p9 = scmp.eq.s32.totalorder %s1453_s28, 0 }
 0x130   : > { %s2261_s29 = sshrl.u32 (!%p1456_p9), %s2468_s22, 6 }
 0x131   : > { %929 = sbr.rel (%p1456_p9) target bundleno = 373 (0x175), region = 40  ;;  %p1457_p10 = scmp.le.s32.totalorder (!%p1456_p9), %s2261_s29, 0 }
 0x138   : > { %1335 = sbr.rel (%p1457_p10) target bundleno = 352 (0x160), region = 116  ;;  %s2459_s15 = smov (!%p1457_p10), %s2255_s26 }
 0x139   : > { %s2460_s20 = smov (!%p1457_p10), %s2058_s12  ;;  %s2270_s27 = smov (!%p1457_p10), 0  }
 0x13a   : > { %s2272_s30 = smov (!%p1457_p10), 0  }
 0x13f LB: >> { %v1117_v9 = vld [vmem:[%s1817_s20] sm:$0xff]  ;;  %v1119_v12 = vld [vmem:[%s1817_s20 + $0x8] sm:$0xff]  ;;  %v1121_v13 = vld [vmem:[%s1817_s20 + $0x10] sm:$0xff]  ;;  %s1245_s4 = sadd.s32 1, %s1821_s27  ;;  %s1111_s30 = sadd.s32 1, %s1825_s30   ;;  %s1825_s30 = sphi %s2272_s30, %s1111_s30   ;;  %s1821_s27 = sphi %s2270_s27, %s2463_s27   ;;  %s1817_s20 = sphi %s2460_s20, %s2462_s20   ;;  %s1813_s15 = sphi %s2459_s15, %s2461_s15  }
 0x140   : >> { %1118 = vst [vmem:[%s1813_s15] sm:$0xff] %v1117_v9  ;;  %1120 = vst [vmem:[%s1813_s15 + $0x8] sm:$0xff] %v1119_v12  ;;  %v1123_v14 = vld [vmem:[%s1817_s20 + $0x18] sm:$0xff]  ;;  %v1125_v15 = vld [vmem:[%s1817_s20 + $0x20] sm:$0xff]  ;;  %p1246_p11 = scmp.ge.s32.totalorder %s1245_s4, %s2261_s29  ;;  %p1110_p12 = scmp.ge.s32.totalorder %s1111_s30, %s2261_s29 }
 0x141   : >> { %1122 = vst [vmem:[%s1813_s15 + $0x10] sm:$0xff] %v1121_v13  ;;  %v1127_v16 = vld [vmem:[%s1817_s20 + $0x28] sm:$0xff]  ;;  %1124 = vst [vmem:[%s1813_s15 + $0x18] sm:$0xff] %v1123_v14  ;;  %v1129_v17 = vld [vmem:[%s1817_s20 + $0x30] sm:$0xff] }
 0x142   : >> { %1126 = vst [vmem:[%s1813_s15 + $0x20] sm:$0xff] %v1125_v15  ;;  %1128 = vst [vmem:[%s1813_s15 + $0x28] sm:$0xff] %v1127_v16  ;;  %v1131_v18 = vld [vmem:[%s1817_s20 + $0x38] sm:$0xff]  ;;  %v1133_v19 = vld [vmem:[%s1817_s20 + $0x40] sm:$0xff]  ;;  %s2470_s4 = smov (%p1246_p11, %s1245_s4), 0 }
 0x143   : >> { %1130 = vst [vmem:[%s1813_s15 + $0x30] sm:$0xff] %v1129_v17  ;;  %1132 = vst [vmem:[%s1813_s15 + $0x38] sm:$0xff] %v1131_v18  ;;  %v1135_v20 = vld [vmem:[%s1817_s20 + $0x48] sm:$0xff]  ;;  %v1137_v21 = vld [vmem:[%s1817_s20 + $0x50] sm:$0xff]  ;;  %s1458_s5 = sshll.u32 %s2470_s4, 9  ;;  %s2463_s27 = smov %s2470_s4 }
 0x144   : >> { %1134 = vst [vmem:[%s1813_s15 + $0x40] sm:$0xff] %v1133_v19  ;;  %v1139_v22 = vld [vmem:[%s1817_s20 + $0x58] sm:$0xff]  ;;  %1136 = vst [vmem:[%s1813_s15 + $0x48] sm:$0xff] %v1135_v20  ;;  %v1141_v23 = vld [vmem:[%s1817_s20 + $0x60] sm:$0xff]  ;;  %s2328_s6 = scalar_lea.vmem %s2058_s12, %s1458_s5 [#allocation2]   ;;  %s2331_s7 = scalar_lea.vmem %s2255_s26, %s1458_s5  }
 0x145   : >> { %1138 = vst [vmem:[%s1813_s15 + $0x50] sm:$0xff] %v1137_v21  ;;  %1140 = vst [vmem:[%s1813_s15 + $0x58] sm:$0xff] %v1139_v22  ;;  %v1143_v24 = vld [vmem:[%s1817_s20 + $0x68] sm:$0xff]  ;;  %v1145_v25 = vld [vmem:[%s1817_s20 + $0x70] sm:$0xff] }
 0x146   : >> { %1142 = vst [vmem:[%s1813_s15 + $0x60] sm:$0xff] %v1141_v23  ;;  %1144 = vst [vmem:[%s1813_s15 + $0x68] sm:$0xff] %v1143_v24  ;;  %v1147_v26 = vld [vmem:[%s1817_s20 + $0x78] sm:$0xff]  ;;  %v1149_v27 = vld [vmem:[%s1817_s20 + $0x80] sm:$0xff] }
 0x147   : >> { %1146 = vst [vmem:[%s1813_s15 + $0x70] sm:$0xff] %v1145_v25  ;;  %v1151_v28 = vld [vmem:[%s1817_s20 + $0x88] sm:$0xff]  ;;  %1148 = vst [vmem:[%s1813_s15 + $0x78] sm:$0xff] %v1147_v26  ;;  %v1153_v29 = vld [vmem:[%s1817_s20 + $0x90] sm:$0xff] }
 0x148   : >> { %1150 = vst [vmem:[%s1813_s15 + $0x80] sm:$0xff] %v1149_v27  ;;  %1152 = vst [vmem:[%s1813_s15 + $0x88] sm:$0xff] %v1151_v28  ;;  %v1155_v30 = vld [vmem:[%s1817_s20 + $0x98] sm:$0xff]  ;;  %v1157_v31 = vld [vmem:[%s1817_s20 + $0xa0] sm:$0xff] }
 0x149   : >> { %1154 = vst [vmem:[%s1813_s15 + $0x90] sm:$0xff] %v1153_v29  ;;  %1156 = vst [vmem:[%s1813_s15 + $0x98] sm:$0xff] %v1155_v30  ;;  %v1159_v32 = vld [vmem:[%s1817_s20 + $0xa8] sm:$0xff]  ;;  %v1161_v33 = vld [vmem:[%s1817_s20 + $0xb0] sm:$0xff] }
 0x14a   : >> { %1158 = vst [vmem:[%s1813_s15 + $0xa0] sm:$0xff] %v1157_v31  ;;  %v1163_v34 = vld [vmem:[%s1817_s20 + $0xb8] sm:$0xff]  ;;  %1160 = vst [vmem:[%s1813_s15 + $0xa8] sm:$0xff] %v1159_v32  ;;  %v1165_v35 = vld [vmem:[%s1817_s20 + $0xc0] sm:$0xff] }
 0x14b   : >> { %1162 = vst [vmem:[%s1813_s15 + $0xb0] sm:$0xff] %v1161_v33  ;;  %1164 = vst [vmem:[%s1813_s15 + $0xb8] sm:$0xff] %v1163_v34  ;;  %v1167_v36 = vld [vmem:[%s1817_s20 + $0xc8] sm:$0xff]  ;;  %v1169_v37 = vld [vmem:[%s1817_s20 + $0xd0] sm:$0xff] }
 0x14c   : >> { %1166 = vst [vmem:[%s1813_s15 + $0xc0] sm:$0xff] %v1165_v35  ;;  %1168 = vst [vmem:[%s1813_s15 + $0xc8] sm:$0xff] %v1167_v36  ;;  %v1171_v38 = vld [vmem:[%s1817_s20 + $0xd8] sm:$0xff]  ;;  %v1173_v39 = vld [vmem:[%s1817_s20 + $0xe0] sm:$0xff] }
 0x14d   : >> { %1170 = vst [vmem:[%s1813_s15 + $0xd0] sm:$0xff] %v1169_v37  ;;  %v1175_v40 = vld [vmem:[%s1817_s20 + $0xe8] sm:$0xff]  ;;  %1172 = vst [vmem:[%s1813_s15 + $0xd8] sm:$0xff] %v1171_v38  ;;  %v1177_v41 = vld [vmem:[%s1817_s20 + $0xf0] sm:$0xff] }
 0x14e   : >> { %1174 = vst [vmem:[%s1813_s15 + $0xe0] sm:$0xff] %v1173_v39  ;;  %1176 = vst [vmem:[%s1813_s15 + $0xe8] sm:$0xff] %v1175_v40  ;;  %v1179_v42 = vld [vmem:[%s1817_s20 + $0xf8] sm:$0xff]  ;;  %v1181_v43 = vld [vmem:[%s1817_s20 + $0x100] sm:$0xff] }
 0x14f   : >> { %1178 = vst [vmem:[%s1813_s15 + $0xf0] sm:$0xff] %v1177_v41  ;;  %1180 = vst [vmem:[%s1813_s15 + $0xf8] sm:$0xff] %v1179_v42  ;;  %v1183_v44 = vld [vmem:[%s1817_s20 + $0x108] sm:$0xff]  ;;  %v1185_v45 = vld [vmem:[%s1817_s20 + $0x110] sm:$0xff] }
 0x150   : >> { %1182 = vst [vmem:[%s1813_s15 + $0x100] sm:$0xff] %v1181_v43  ;;  %v1187_v46 = vld [vmem:[%s1817_s20 + $0x118] sm:$0xff]  ;;  %1184 = vst [vmem:[%s1813_s15 + $0x108] sm:$0xff] %v1183_v44  ;;  %v1189_v47 = vld [vmem:[%s1817_s20 + $0x120] sm:$0xff] }
 0x151   : >> { %1186 = vst [vmem:[%s1813_s15 + $0x110] sm:$0xff] %v1185_v45  ;;  %1188 = vst [vmem:[%s1813_s15 + $0x118] sm:$0xff] %v1187_v46  ;;  %v1191_v48 = vld [vmem:[%s1817_s20 + $0x128] sm:$0xff]  ;;  %v1193_v49 = vld [vmem:[%s1817_s20 + $0x130] sm:$0xff] }
 0x152   : >> { %1190 = vst [vmem:[%s1813_s15 + $0x120] sm:$0xff] %v1189_v47  ;;  %1192 = vst [vmem:[%s1813_s15 + $0x128] sm:$0xff] %v1191_v48  ;;  %v1195_v50 = vld [vmem:[%s1817_s20 + $0x138] sm:$0xff]  ;;  %v1197_v51 = vld [vmem:[%s1817_s20 + $0x140] sm:$0xff] }
 0x153   : >> { %1194 = vst [vmem:[%s1813_s15 + $0x130] sm:$0xff] %v1193_v49  ;;  %v1199_v52 = vld [vmem:[%s1817_s20 + $0x148] sm:$0xff]  ;;  %1196 = vst [vmem:[%s1813_s15 + $0x138] sm:$0xff] %v1195_v50  ;;  %v1201_v53 = vld [vmem:[%s1817_s20 + $0x150] sm:$0xff] }
 0x154   : >> { %1198 = vst [vmem:[%s1813_s15 + $0x140] sm:$0xff] %v1197_v51  ;;  %1200 = vst [vmem:[%s1813_s15 + $0x148] sm:$0xff] %v1199_v52  ;;  %v1203_v54 = vld [vmem:[%s1817_s20 + $0x158] sm:$0xff]  ;;  %v1205_v55 = vld [vmem:[%s1817_s20 + $0x160] sm:$0xff] }
 0x155   : >> { %1202 = vst [vmem:[%s1813_s15 + $0x150] sm:$0xff] %v1201_v53  ;;  %1204 = vst [vmem:[%s1813_s15 + $0x158] sm:$0xff] %v1203_v54  ;;  %v1207_v56 = vld [vmem:[%s1817_s20 + $0x168] sm:$0xff]  ;;  %v1209_v57 = vld [vmem:[%s1817_s20 + $0x170] sm:$0xff] }
 0x156   : >> { %1206 = vst [vmem:[%s1813_s15 + $0x160] sm:$0xff] %v1205_v55  ;;  %v1211_v58 = vld [vmem:[%s1817_s20 + $0x178] sm:$0xff]  ;;  %1208 = vst [vmem:[%s1813_s15 + $0x168] sm:$0xff] %v1207_v56  ;;  %v1213_v59 = vld [vmem:[%s1817_s20 + $0x180] sm:$0xff] }
 0x157   : >> { %1210 = vst [vmem:[%s1813_s15 + $0x170] sm:$0xff] %v1209_v57  ;;  %1212 = vst [vmem:[%s1813_s15 + $0x178] sm:$0xff] %v1211_v58  ;;  %v1215_v60 = vld [vmem:[%s1817_s20 + $0x188] sm:$0xff]  ;;  %v1217_v61 = vld [vmem:[%s1817_s20 + $0x190] sm:$0xff] }
 0x158   : >> { %1214 = vst [vmem:[%s1813_s15 + $0x180] sm:$0xff] %v1213_v59  ;;  %1216 = vst [vmem:[%s1813_s15 + $0x188] sm:$0xff] %v1215_v60  ;;  %v1219_v62 = vld [vmem:[%s1817_s20 + $0x198] sm:$0xff]  ;;  %v1221_v63 = vld [vmem:[%s1817_s20 + $0x1a0] sm:$0xff] }
 0x159   : >> { %1218 = vst [vmem:[%s1813_s15 + $0x190] sm:$0xff] %v1217_v61  ;;  %v1223_v0 = vld [vmem:[%s1817_s20 + $0x1a8] sm:$0xff]  ;;  %1220 = vst [vmem:[%s1813_s15 + $0x198] sm:$0xff] %v1219_v62  ;;  %v1225_v1 = vld [vmem:[%s1817_s20 + $0x1b0] sm:$0xff]  ;;  %1113 = sbr.rel (!%p1110_p12) target bundleno = 319 (0x13f), region = 122 }
 0x15a   : >> { %1222 = vst [vmem:[%s1813_s15 + $0x1a0] sm:$0xff] %v1221_v63  ;;  %1224 = vst [vmem:[%s1813_s15 + $0x1a8] sm:$0xff] %v1223_v0  ;;  %v1227_v2 = vld [vmem:[%s1817_s20 + $0x1b8] sm:$0xff]  ;;  %v1229_v3 = vld [vmem:[%s1817_s20 + $0x1c0] sm:$0xff] }
 0x15b   : >> { %1226 = vst [vmem:[%s1813_s15 + $0x1b0] sm:$0xff] %v1225_v1  ;;  %1228 = vst [vmem:[%s1813_s15 + $0x1b8] sm:$0xff] %v1227_v2  ;;  %v1231_v4 = vld [vmem:[%s1817_s20 + $0x1c8] sm:$0xff]  ;;  %v1233_v5 = vld [vmem:[%s1817_s20 + $0x1d0] sm:$0xff] }
 0x15c   : >> { %1230 = vst [vmem:[%s1813_s15 + $0x1c0] sm:$0xff] %v1229_v3  ;;  %v1235_v6 = vld [vmem:[%s1817_s20 + $0x1d8] sm:$0xff]  ;;  %1232 = vst [vmem:[%s1813_s15 + $0x1c8] sm:$0xff] %v1231_v4  ;;  %v1237_v7 = vld [vmem:[%s1817_s20 + $0x1e0] sm:$0xff] }
 0x15d   : >> { %1234 = vst [vmem:[%s1813_s15 + $0x1d0] sm:$0xff] %v1233_v5  ;;  %1236 = vst [vmem:[%s1813_s15 + $0x1d8] sm:$0xff] %v1235_v6  ;;  %v1239_v8 = vld [vmem:[%s1817_s20 + $0x1e8] sm:$0xff]  ;;  %v1241_v10 = vld [vmem:[%s1817_s20 + $0x1f0] sm:$0xff] }
 0x15e   : >> { %1238 = vst [vmem:[%s1813_s15 + $0x1e0] sm:$0xff] %v1237_v7  ;;  %1240 = vst [vmem:[%s1813_s15 + $0x1e8] sm:$0xff] %v1239_v8  ;;  %v1243_v11 = vld [vmem:[%s1817_s20 + $0x1f8] sm:$0xff]  ;;  %s2462_s20 = smov %s2328_s6 }
 0x15f   : >> { %1242 = vst [vmem:[%s1813_s15 + $0x1f0] sm:$0xff] %v1241_v10  ;;  %1244 = vst [vmem:[%s1813_s15 + $0x1f8] sm:$0xff] %v1243_v11  ;;  %s2461_s15 = smov %s2331_s7 }
 0x160 PF: > { %s2436_s8 = sand.u32 63, %s2468_s22   ;;  %s1469_s9 = sshll.u32 %s2261_s29, 9 }
 0x161   : > { %s1256_s10 = scalar_lea.vmem %s2058_s12, %s1469_s9 [#allocation2]   ;;  %s1258_s11 = scalar_lea.vmem %s2255_s26, %s1469_s9  }
 0x162   : > { %p1463_p13 = scmp.le.s32.totalorder %s2436_s8, 0 }
 0x163   : > { %s1827_s14 = smov (!%p1463_p13), %s1258_s11   ;;  %s1831_s17 = smov (!%p1463_p13), %s1256_s10  }
 0x164   : > { %1349 = sbr.rel (%p1463_p13) target bundleno = 373 (0x175), region = 127  ;;  %s1835_s18 = smov (!%p1463_p13), 0  }
 0x165   : > { %s1839_s21 = smov (!%p1463_p13), 0  }
 0x16b LB: >> { %v1268_v9 = vld [vmem:[%s1833_s17] sm:$0xff]  ;;  %s1270_s22 = sadd.s32 1, %s1837_s18  ;;  %s1262_s21 = sadd.s32 1, %s1841_s21   ;;  %s1841_s21 = sphi %s1839_s21, %s1262_s21   ;;  %s1837_s18 = sphi %s1835_s18, %s1836_s18   ;;  %s1833_s17 = sphi %s1831_s17, %s1275_s17   ;;  %s1829_s14 = sphi %s1827_s14, %s1276_s14  }
 0x16c   : >> { %1269 = vst [vmem:[%s1829_s14] sm:$0xff] %v1268_v9  ;;  %p1271_p0 = scmp.ge.s32.totalorder %s1270_s22, %s2436_s8  ;;  %p1261_p1 = scmp.ge.s32.totalorder %s1262_s21, %s2436_s8 }
 0x16e   : >> { %s2472_s22 = smov (%p1271_p0, %s1270_s22), 0  ;;  %1264 = sbr.rel (!%p1261_p1) target bundleno = 363 (0x16b), region = 133 }
 0x16f   : >> { %s1464_s12 = sshll.u32 %s2472_s22, 3  ;;  %s1836_s18 = smov %s2472_s22  }
 0x170   : >> { %s1275_s17 = scalar_lea.vmem %s1256_s10, %s1464_s12 [#allocation2]   ;;  %s1276_s14 = scalar_lea.vmem %s1258_s11, %s1464_s12  }
 0x175 PF: > { %p10_p2 = scmp.ge.s32.totalorder %s1878_s16, 4   ;;  %s2464_s12 = smov %s1805_s13 }
 0x176   : > { %s2465_s13 = smov %s1886_s19  ;;  %s2466_s14 = smov %s1878_s16 }
 0x177   :  { %12 = sbr.rel (!%p10_p2) target bundleno = 2 (0x2), region = 144 }

</bundles_post_ra>
